<compile_context>
chip_gen: v5e
topology: v5e:2x2
jax: 0.10.0
libtpu: 0.0.40
codegen_flags: <defaults>
</compile_context>

<pallas_src>
import functools

import jax
import jax.numpy as jnp
from jax.experimental import pallas as pl
from jax.experimental.pallas import tpu as pltpu

LANE = 128
ROW_ALIGN = 16   # batch-tile alignment safe for f32 (8-sublane) and bf16/f16 (16)


def _round_up(n, m):
    return ((n + m - 1) // m) * m


def _cdiv(a, b):
    return (a + b - 1) // b


def encoder_kernel(x_ref, w1_ref, b1_ref, w2_ref, b2_ref, w3_ref, b3_ref, o_ref):
    # One batch tile per grid step; all three matmuls + ReLUs fused so the
    # h1/h2 intermediates never touch HBM.
    x = x_ref[...].astype(jnp.bfloat16)                       # MXU-native input

    # Layers 1/2: f32 MXU accumulate, then bias + ReLU on the bf16 VALU path
    # (halves elementwise ops on v6e/v7x; identical math path on v5e).
    a1 = jnp.dot(x, w1_ref[...], preferred_element_type=jnp.float32)
    h1 = jnp.maximum(a1.astype(jnp.bfloat16) + b1_ref[...], 0.0)

    a2 = jnp.dot(h1, w2_ref[...], preferred_element_type=jnp.float32)
    h2 = jnp.maximum(a2.astype(jnp.bfloat16) + b2_ref[...], 0.0)

    # Output layer: true q_dim columns only -> no 128-wide write amplification.
    out = jnp.dot(h2, w3_ref[...], preferred_element_type=jnp.float32) + b3_ref[...]
    o_ref[...] = out.astype(o_ref.dtype)


@functools.partial(jax.jit, static_argnames=("tb",))
def _encoder_forward_padded(x, w1, b1, w2, b2, w3, b3, *, tb):
    b_pad, x_dim = x.shape
    hid_pad = w1.shape[1]
    q_dim = w3.shape[1]
    grid = (b_pad // tb,)                    # tb divides b_pad by construction

    # Weights / biases: same block every grid step -> VMEM-resident, no re-DMA.
    resident = lambda a: pl.BlockSpec(a.shape, lambda i: (0,) * a.ndim)

    in_bytes = sum(int(a.size) * a.dtype.itemsize
                   for a in (x, w1, b1, w2, b2, w3, b3))
    out_bytes = int(b_pad) * int(q_dim) * 4
    flops = 2 * int(b_pad) * (x_dim * hid_pad + hid_pad * hid_pad + hid_pad * q_dim)

    return pl.pallas_call(
        encoder_kernel,
        out_shape=jax.ShapeDtypeStruct((b_pad, q_dim), jnp.float32),
        grid=grid,
        in_specs=[
            pl.BlockSpec((tb, x_dim), lambda i: (i, 0)),      # streamed x tile
            resident(w1), resident(b1),
            resident(w2), resident(b2),
            resident(w3), resident(b3),
        ],
        out_specs=pl.BlockSpec((tb, q_dim), lambda i: (i, 0)),
        compiler_params=pltpu.CompilerParams(
            dimension_semantics=("parallel",),                # dual-TC on v7x
        ),
        cost_estimate=pl.CostEstimate(
            flops=int(flops),
            transcendentals=0,
            bytes_accessed=int(in_bytes + out_bytes),
        ),
    )(x, w1, b1, w2, b2, w3, b3)


def encoder_forward(x, params, *, block_b=2048):
    """x: (B, x_dim) float array. params from init_encoder_params."""
    w1, b1 = params["w1"], params["b1"]
    w2, b2 = params["w2"], params["b2"]
    w3, b3 = params["w3"], params["b3"]

    # Mirrors `x_.float()` only when needed: bf16/f16/f32 inputs are consumed
    # directly (kernel casts to bf16 for the MXU), avoiding an extra HBM pass.
    if x.dtype not in (jnp.float32, jnp.bfloat16, jnp.float16):
        x = x.astype(jnp.float32)

    B = x.shape[0]
    block_b = max(ROW_ALIGN, _round_up(block_b, ROW_ALIGN))
    b_aligned = _round_up(B, ROW_ALIGN)

    n_steps = _cdiv(b_aligned, block_b)
    # v7x dual-TC: give the "parallel" batch axis >= 2 steps when there is
    # enough work to amortize the ~0.35 us per-step pipeline overhead.
    if n_steps == 1 and b_aligned >= 1024:
        n_steps = 2
    tb = _round_up(_cdiv(b_aligned, n_steps), ROW_ALIGN)
    b_pad = n_steps * tb                     # pads <= ~ROW_ALIGN rows per step

    if b_pad != B:
        x = jnp.pad(x, ((0, b_pad - B), (0, 0)))

    out = _encoder_forward_padded(x, w1, b1, w2, b2, w3, b3, tb=tb)
    return out[:B]


def init_encoder_params(key, x_dim, q_dim, hid_units):
    """nn.Linear-style init U(-1/sqrt(fan_in), 1/sqrt(fan_in)).

    Hidden feature dims are zero-padded to a multiple of 128 so the 2nd/3rd
    matmul K dims are lane-dense; the OUTPUT layer keeps the true q_dim column
    count so the kernel only writes q_dim f32 columns per row.  Padding is
    zeros -> math unchanged.  Weights (and hidden-layer biases) stored bf16.
    """
    hid_pad = _round_up(hid_units, LANE)
    ks = jax.random.split(key, 6)

    def linear(kw, kb, fan_in, fan_out, fan_in_pad, fan_out_pad, w_dtype, b_dtype):
        bound = 1.0 / float(fan_in) ** 0.5
        w = jax.random.uniform(kw, (fan_in, fan_out), jnp.float32, -bound, bound)
        b = jax.random.uniform(kb, (1, fan_out), jnp.float32, -bound, bound)
        w_pad = jnp.zeros((fan_in_pad, fan_out_pad), jnp.float32)
        w_pad = w_pad.at[:fan_in, :fan_out].set(w)
        b_pad = jnp.zeros((1, fan_out_pad), jnp.float32).at[:, :fan_out].set(b)
        return w_pad.astype(w_dtype), b_pad.astype(b_dtype)

    w1, b1 = linear(ks[0], ks[1], x_dim, hid_units, x_dim, hid_pad,
                    jnp.bfloat16, jnp.bfloat16)
    w2, b2 = linear(ks[2], ks[3], hid_units, hid_units, hid_pad, hid_pad,
                    jnp.bfloat16, jnp.bfloat16)
    w3, b3 = linear(ks[4], ks[5], hid_units, q_dim, hid_pad, q_dim,
                    jnp.bfloat16, jnp.float32)
    return {"w1": w1, "b1": b1, "w2": w2, "b2": b2, "w3": w3, "b3": b3,
            "q_dim": q_dim}


def encoder_reference(x, params):
    """Pure-JAX f32 reference using the same stored (bf16-rounded) weights."""
    w1 = params["w1"].astype(jnp.float32)
    w2 = params["w2"].astype(jnp.float32)
    w3 = params["w3"].astype(jnp.float32)
    b1 = params["b1"].astype(jnp.float32)
    b2 = params["b2"].astype(jnp.float32)
    h1 = jax.nn.relu(x.astype(jnp.float32) @ w1 + b1)
    h2 = jax.nn.relu(h1 @ w2 + b2)
    return (h2 @ w3 + params["b3"])[:, : params["q_dim"]]


if __name__ == "__main__":
    key = jax.random.PRNGKey(0)
    k_x, k_x2, k_x3, k_p = jax.random.split(key, 4)

    # Small shapes consistent with the module: batch=8, x_dim=16, hid=32, q_dim=8
    B, x_dim, q_dim, hid_units = 8, 16, 8, 32
    params = init_encoder_params(k_p, x_dim, q_dim, hid_units)

    x = jax.random.normal(k_x, (B, x_dim), jnp.float32)
    out = jax.block_until_ready(encoder_forward(x, params))
    ref = encoder_reference(x, params)
    assert out.shape == (B, q_dim)
    # bf16 matmul inputs / bf16 hidden bias+relu (f32 acc) vs f32 ref -> loose tol.
    assert jnp.allclose(out, ref, atol=5e-2, rtol=5e-2), "mismatch (B=8)"

    # Multi-step grid + row-padding path (grid=3, B not a multiple of the tile).
    B2 = 300
    x2 = jax.random.normal(k_x2, (B2, x_dim), jnp.float32)
    out2 = jax.block_until_ready(encoder_forward(x2, params, block_b=128))
    ref2 = encoder_reference(x2, params)
    assert out2.shape == (B2, q_dim)
    assert jnp.allclose(out2, ref2, atol=5e-2, rtol=5e-2), "mismatch (B=300)"

    # Dual-TC split path: a single-block batch (>=1024 rows) forced to 2 steps.
    B3 = 1500
    x3 = jax.random.normal(k_x3, (B3, x_dim), jnp.float32)
    out3 = jax.block_until_ready(encoder_forward(x3, params))
    ref3 = encoder_reference(x3, params)
    assert out3.shape == (B3, q_dim)
    assert jnp.allclose(out3, ref3, atol=5e-2, rtol=5e-2), "mismatch (B=1500)"

    print("KERNEL_OK")
</pallas_src>

<mosaic_0001>
module attributes {stable_mosaic.version = 11 : i64} {
  func.func @encoder_kernel(%arg0: i32, %arg1: memref<16x16xf32, #tpu.memory_space<vmem>>, %arg2: memref<16x128xbf16, #tpu.memory_space<vmem>>, %arg3: memref<1x128xbf16, #tpu.memory_space<vmem>>, %arg4: memref<128x128xbf16, #tpu.memory_space<vmem>>, %arg5: memref<1x128xbf16, #tpu.memory_space<vmem>>, %arg6: memref<128x8xbf16, #tpu.memory_space<vmem>>, %arg7: memref<1x8xf32, #tpu.memory_space<vmem>>, %arg8: memref<16x8xf32, #tpu.memory_space<vmem>>) attributes {dimension_semantics = [#tpu.dimension_semantics<parallel>], iteration_bounds = array<i64: 1>, scalar_prefetch = 0 : i64, scratch_operands = 0 : i64, tpu.core_type = #tpu.core_type<tc>, window_params = [{transform_indices = @transform_0, window_bounds = array<i64: 16, 16>}, {pipeline_mode = #tpu.pipeline_mode<synchronous>, transform_indices = @transform_1, window_bounds = array<i64: 16, 128>}, {pipeline_mode = #tpu.pipeline_mode<synchronous>, transform_indices = @transform_2, window_bounds = array<i64: 1, 128>}, {pipeline_mode = #tpu.pipeline_mode<synchronous>, transform_indices = @transform_3, window_bounds = array<i64: 128, 128>}, {pipeline_mode = #tpu.pipeline_mode<synchronous>, transform_indices = @transform_4, window_bounds = array<i64: 1, 128>}, {pipeline_mode = #tpu.pipeline_mode<synchronous>, transform_indices = @transform_5, window_bounds = array<i64: 128, 8>}, {pipeline_mode = #tpu.pipeline_mode<synchronous>, transform_indices = @transform_6, window_bounds = array<i64: 1, 8>}, {transform_indices = @transform_7, window_bounds = array<i64: 16, 8>}]} {
    %c0 = arith.constant 0 : index
    %c0_0 = arith.constant 0 : index
    %0 = vector.load %arg1[%c0, %c0_0] : memref<16x16xf32, #tpu.memory_space<vmem>>, vector<16x16xf32>
    %1 = arith.truncf %0 : vector<16x16xf32> to vector<16x16xbf16>
    %c0_1 = arith.constant 0 : index
    %c0_2 = arith.constant 0 : index
    %2 = vector.load %arg2[%c0_1, %c0_2] : memref<16x128xbf16, #tpu.memory_space<vmem>>, vector<16x128xbf16>
    %cst = arith.constant dense<0.000000e+00> : vector<16x128xf32>
    %3 = tpu.matmul %1, %2, %cst {dimension_numbers = #tpu.dot_dimension_numbers<[1], [0], [0], [1], [0, 0, 1, 1], [], []>} : vector<16x16xbf16>, vector<16x128xbf16>, vector<16x128xf32> -> vector<16x128xf32>
    %4 = arith.truncf %3 : vector<16x128xf32> to vector<16x128xbf16>
    %c0_3 = arith.constant 0 : index
    %c0_4 = arith.constant 0 : index
    %5 = vector.load %arg3[%c0_3, %c0_4] : memref<1x128xbf16, #tpu.memory_space<vmem>>, vector<1x128xbf16>
    %6 = vector.broadcast %5 : vector<1x128xbf16> to vector<16x128xbf16>
    %7 = arith.addf %4, %6 : vector<16x128xbf16>
    %cst_5 = arith.constant 0.000000e+00 : bf16
    %8 = vector.broadcast %cst_5 : bf16 to vector<16x128xbf16>
    %9 = arith.maximumf %7, %8 : vector<16x128xbf16>
    %c0_6 = arith.constant 0 : index
    %c0_7 = arith.constant 0 : index
    %10 = vector.load %arg4[%c0_6, %c0_7] : memref<128x128xbf16, #tpu.memory_space<vmem>>, vector<128x128xbf16>
    %cst_8 = arith.constant dense<0.000000e+00> : vector<16x128xf32>
    %11 = tpu.matmul %9, %10, %cst_8 {dimension_numbers = #tpu.dot_dimension_numbers<[1], [0], [0], [1], [0, 0, 1, 1], [], []>} : vector<16x128xbf16>, vector<128x128xbf16>, vector<16x128xf32> -> vector<16x128xf32>
    %12 = arith.truncf %11 : vector<16x128xf32> to vector<16x128xbf16>
    %c0_9 = arith.constant 0 : index
    %c0_10 = arith.constant 0 : index
    %13 = vector.load %arg5[%c0_9, %c0_10] : memref<1x128xbf16, #tpu.memory_space<vmem>>, vector<1x128xbf16>
    %14 = vector.broadcast %13 : vector<1x128xbf16> to vector<16x128xbf16>
    %15 = arith.addf %12, %14 : vector<16x128xbf16>
    %cst_11 = arith.constant 0.000000e+00 : bf16
    %16 = vector.broadcast %cst_11 : bf16 to vector<16x128xbf16>
    %17 = arith.maximumf %15, %16 : vector<16x128xbf16>
    %c0_12 = arith.constant 0 : index
    %c0_13 = arith.constant 0 : index
    %18 = vector.load %arg6[%c0_12, %c0_13] : memref<128x8xbf16, #tpu.memory_space<vmem>>, vector<128x8xbf16>
    %cst_14 = arith.constant dense<0.000000e+00> : vector<16x8xf32>
    %19 = tpu.matmul %17, %18, %cst_14 {dimension_numbers = #tpu.dot_dimension_numbers<[1], [0], [0], [1], [0, 0, 1, 1], [], []>} : vector<16x128xbf16>, vector<128x8xbf16>, vector<16x8xf32> -> vector<16x8xf32>
    %c0_15 = arith.constant 0 : index
    %c0_16 = arith.constant 0 : index
    %20 = vector.load %arg7[%c0_15, %c0_16] : memref<1x8xf32, #tpu.memory_space<vmem>>, vector<1x8xf32>
    %21 = vector.broadcast %20 : vector<1x8xf32> to vector<16x8xf32>
    %22 = arith.addf %19, %21 : vector<16x8xf32>
    %c0_17 = arith.constant 0 : index
    %c0_18 = arith.constant 0 : index
    %23 = vector.load %arg8[%c0_17, %c0_18] : memref<16x8xf32, #tpu.memory_space<vmem>>, vector<16x8xf32>
    tpu.vector_store %arg8[%c0_17, %c0_18], %22 {strides = array<i32>} : memref<16x8xf32, #tpu.memory_space<vmem>>, vector<16x8xf32>,
    return
  }
  func.func @transform_0(%arg0: i32) -> (i32, i32) {
    %c0_i32 = arith.constant 0 : i32
    %c0_i32_0 = arith.constant 0 : i32
    return %arg0, %c0_i32 : i32, i32
  }
  func.func @transform_1(%arg0: i32) -> (i32, i32) {
    %c0_i32 = arith.constant 0 : i32
    %c0_i32_0 = arith.constant 0 : i32
    %c0_i32_1 = arith.constant 0 : i32
    return %c0_i32, %c0_i32_0 : i32, i32
  }
  func.func @transform_2(%arg0: i32) -> (i32, i32) {
    %c0_i32 = arith.constant 0 : i32
    %c0_i32_0 = arith.constant 0 : i32
    %c0_i32_1 = arith.constant 0 : i32
    return %c0_i32, %c0_i32_0 : i32, i32
  }
  func.func @transform_3(%arg0: i32) -> (i32, i32) {
    %c0_i32 = arith.constant 0 : i32
    %c0_i32_0 = arith.constant 0 : i32
    %c0_i32_1 = arith.constant 0 : i32
    return %c0_i32, %c0_i32_0 : i32, i32
  }
  func.func @transform_4(%arg0: i32) -> (i32, i32) {
    %c0_i32 = arith.constant 0 : i32
    %c0_i32_0 = arith.constant 0 : i32
    %c0_i32_1 = arith.constant 0 : i32
    return %c0_i32, %c0_i32_0 : i32, i32
  }
  func.func @transform_5(%arg0: i32) -> (i32, i32) {
    %c0_i32 = arith.constant 0 : i32
    %c0_i32_0 = arith.constant 0 : i32
    %c0_i32_1 = arith.constant 0 : i32
    return %c0_i32, %c0_i32_0 : i32, i32
  }
  func.func @transform_6(%arg0: i32) -> (i32, i32) {
    %c0_i32 = arith.constant 0 : i32
    %c0_i32_0 = arith.constant 0 : i32
    %c0_i32_1 = arith.constant 0 : i32
    return %c0_i32, %c0_i32_0 : i32, i32
  }
  func.func @transform_7(%arg0: i32) -> (i32, i32) {
    %c0_i32 = arith.constant 0 : i32
    %c0_i32_0 = arith.constant 0 : i32
    return %arg0, %c0_i32 : i32, i32
  }
}

</mosaic_0001>

<bundles_post_ra>
// kernel: _encoder_forward_padded.1
= control target key start
LH: loop header
LB: loop body
LE: loop exit
PB: predicated region body
PF: predicated region fallthrough
CT: control target
= control target key end

     0   :  { %12 = vsyncpa [#allocation3], 0  ;;  %s555_s0 = inlined_call_operand.hbm [shape: f32[16,16], index: 0, kind: input, shape index: {}]   ;;  %s556_s1 = inlined_call_operand.hbm [shape: bf16[16,128], index: 1, kind: input, shape index: {}]   ;;  %s557_s2 = inlined_call_operand.vmem [shape: bf16[1,128], index: 2, kind: input, shape index: {}]   ;;  %s558_s3 = inlined_call_operand.vmem [shape: bf16[128,128], index: 3, kind: input, shape index: {}]   ;;  %s559_s4 = inlined_call_operand.vmem [shape: bf16[1,128], index: 4, kind: input, shape index: {}]   ;;  %s560_s5 = inlined_call_operand.vmem [shape: bf16[128,8], index: 5, kind: input, shape index: {}]   ;;  %s561_s6 = inlined_call_operand.vmem [shape: f32[1,8], index: 6, kind: input, shape index: {}]   ;;  %s562_s7 = inlined_call_operand.vmem [shape: f32[16,8], index: 7, kind: output, shape index: {}]  }
   0x1   :  { %s18_s26 = sshll.u32 %s555_s0, 4  ;;  %s19_s26 = int_to_ptr.hbm [resolvable:$true] %s18_s26 }
   0x2   :  { %13 = vsyncpa [#allocation5], 0  ;;  %s440_s27 = smov [#allocation2]   ;;  %s31_s8 = sshll.u32 %s556_s1, 4  ;;  %s32_s8 = int_to_ptr.hbm [resolvable:$true] %s31_s8 }
   0x3   :  { %s20_s28 = sshll.u32 %s440_s27, 4  ;;  %s441_s9 = smov 128   ;;  %s21_s28 = int_to_ptr.vmem [resolvable:$true] %s20_s28 }
   0x4   :  { %s442_s10 = smov 8   ;;  %s443_s11 = smov [#allocation4]  }
   0x5   :  { %26 = dma.hbm_to_vmem [thread:$0]  %s19_s26, 256, %s21_s28, [#allocation3], %s441_s9, %s441_s9, %s442_s10  }
   0x6   :  { %s33_s12 = sshll.u32 %s443_s11, 4  ;;  %s444_s13 = smov 64   ;;  %s34_s12 = int_to_ptr.vmem [resolvable:$true] %s33_s12 }
   0x7   :  { %s445_s14 = smov 4  }
   0x8   :  { %39 = dma.hbm_to_vmem [thread:$0]  %s32_s8, 128, %s34_s12, [#allocation5], %s444_s13, %s444_s13, %s445_s14  }
   0x9   :  { %436 = dma.done.wait [#allocation3], 256  }
   0xa   :  { %437 = vsyncadd [#allocation3], 4294967040 }
   0xb   :  { %438 = dma.done.wait [#allocation5], 128  }
   0xc   :  { %439 = vsyncadd [#allocation5], 4294967168  ;;  %v364_v0 = vld [vmem:[#allocation4] sm:$0xff]  ;;  %v59_v1 = vld [vmem:[#allocation2] sm:$0xff]  ;;  %vm70_vm0 = vcmask 130048   ;;  %vm286_vm1 = vcmask 64512  }
   0xd   :  { %v60_v2 = vld [vmem:[#allocation2 + $0x8] sm:$0xff]  ;;  %v372_v4 = vld [vmem:[%s558_s3 + $0x38] sm:$0xff]  ;;  %81 = vmatpush.bf16.msra.mxu0 %v364_v0  ;;  %v371_v5 = vld [vmem:[%s558_s3 + $0x30] sm:$0xff] }
   0xe   :  { %v61_v3 = vpack.c.bf16 %v60_v2, %v59_v1  ;;  %171 = vmatpush.bf16.msra.mxu1 %v372_v4  ;;  %v370_v6 = vld [vmem:[%s558_s3 + $0x28] sm:$0xff]  ;;  %v369_v7 = vld [vmem:[%s558_s3 + $0x20] sm:$0xff]  ;;  %v368_v8 = vld [vmem:[%s558_s3 + $0x18] sm:$0xff] }
   0xf   :  { %v367_v9 = vld [vmem:[%s558_s3 + $0x10] sm:$0xff]  ;;  %v366_v10 = vld [vmem:[%s558_s3 + $0x8] sm:$0xff]  ;;  %v365_v11 = vld [vmem:[%s558_s3] sm:$0xff] }
  0x10   :  { %299 = vmatmul.msk.bf16.vlgmr.msra.gmra.mxu0 %vm70_vm0, %v61_v3  ;;  %v380_v12 = vld [vmem:[%s560_s5 + $0x38] sm:$0xff]  ;;  %v379_v13 = vld [vmem:[%s560_s5 + $0x30] sm:$0xff]  ;;  %v378_v14 = vld [vmem:[%s560_s5 + $0x28] sm:$0xff] }
  0x11   :  { %272 = vmatpush.bf16.msra.mxu2 %v380_v12  ;;  %v90_v15 = vld [vmem:[%s557_s2] sm:$0x1]  ;;  %v376_v31 = vld [vmem:[%s560_s5 + $0x18] sm:$0xff]  ;;  %v375_v32 = vld [vmem:[%s560_s5 + $0x10] sm:$0xff] }
  0x12   :  { %172 = vmatpush.bf16.msra.mxu1 %v371_v5  ;;  %v92_v16 = vpack.i.b16 %v90_v15, %v90_v15  ;;  %v377_v30 = vld [vmem:[%s560_s5 + $0x20] sm:$0xff]  ;;  %v374_v33 = vld [vmem:[%s560_s5 + $0x8] sm:$0xff] }
  0x13   :  { %v373_v34 = vld [vmem:[%s560_s5] sm:$0xff] }
  0x14   :  { %v94_v19 = vperm.slane %v92_v16, 0  ;;  %v187_v35 = vld [vmem:[%s559_s4] sm:$0x1] }
  0x15   :  { %273 = vmatpush.bf16.msra.mxu2 %v379_v13  ;;  %v189_v36 = vpack.i.b16 %v187_v35, %v187_v35  ;;  %v387_v50 = vld [vmem:[%s561_s6] ss:$0 sm:$0xff] }
  0x16   :  { %173 = vmatpush.bf16.msra.mxu1 %v370_v6  ;;  %v97_v21 = vunpack.c.l.bf16 %v94_v19 }
  0x17   :  { %v191_v39 = vperm.slane %v189_v36, 0 }
  0x19   :  { %274 = vmatpush.bf16.msra.mxu2 %v378_v14  ;;  %v194_v41 = vunpack.c.l.bf16 %v191_v39 }
  0x1a   :  { %174 = vmatpush.bf16.msra.mxu1 %v369_v7 }
  0x1d   :  { %275 = vmatpush.bf16.msra.mxu2 %v377_v30 }
  0x1e   :  { %175 = vmatpush.bf16.msra.mxu1 %v368_v8 }
  0x21   :  { %276 = vmatpush.bf16.msra.mxu2 %v376_v31 }
  0x22   :  { %176 = vmatpush.bf16.msra.mxu1 %v367_v9 }
  0x25   :  { %277 = vmatpush.bf16.msra.mxu2 %v375_v32 }
  0x26   :  { %177 = vmatpush.bf16.msra.mxu1 %v366_v10 }
  0x29   :  { %278 = vmatpush.bf16.msra.mxu2 %v374_v33 }
  0x2a   :  { %178 = vmatpush.bf16.msra.mxu1 %v365_v11 }
  0x2d   :  { %279 = vmatpush.bf16.msra.mxu2 %v373_v34 }
  0x8d   :  { %v83_v17 = vpop.f32.mrf.mxu0 }
  0x8e   :  { %v88_v18 = vpack.c.bf16 %v83_v17, %v83_v17 }
  0x90   :  { %v95_v20 = vunpack.c.l.bf16 %v88_v18 }
  0x92   :  { %v98_v24 = vadd.f32 %v97_v21, %v95_v20 }
  0x94   :  { %v104_v28 = vmax.f32 %v98_v24, 0.0 }
  0x95   :  { %v85_v22 = vpop.f32.mrf.mxu0 }
  0x96   :  { %v89_v23 = vpack.c.bf16 %v85_v22, %v85_v22 }
  0x98   :  { %v96_v25 = vunpack.c.l.bf16 %v89_v23 }
  0x9a   :  { %v99_v26 = vadd.f32 %v97_v21, %v96_v25 }
  0x9c   :  { %v105_v27 = vmax.f32 %v99_v26, 0.0 }
  0x9e   :  { %v106_v29 = vpack.c.bf16 %v105_v27, %v104_v28 }
  0xa0   :  { %179 = vmatmul.bf16.vlgmr.msra.gmra.mxu1 %v106_v29 }
 0x11d   :  { %v180_v37 = vpop.f32.mrf.mxu1 }
 0x11e   :  { %v185_v38 = vpack.c.bf16 %v180_v37, %v180_v37 }
 0x120   :  { %v192_v40 = vunpack.c.l.bf16 %v185_v38 }
 0x122   :  { %v195_v44 = vadd.f32 %v194_v41, %v192_v40 }
 0x124   :  { %v201_v48 = vmax.f32 %v195_v44, 0.0 }
 0x125   :  { %v182_v42 = vpop.f32.mrf.mxu1 }
 0x126   :  { %v186_v43 = vpack.c.bf16 %v182_v42, %v182_v42 }
 0x128   :  { %v193_v45 = vunpack.c.l.bf16 %v186_v43 }
 0x12a   :  { %v196_v46 = vadd.f32 %v194_v41, %v193_v45 }
 0x12c   :  { %v202_v47 = vmax.f32 %v196_v46, 0.0 }
 0x12e   :  { %v203_v49 = vpack.c.bf16 %v202_v47, %v201_v48 }
 0x130   :  { %280 = vmatmul.bf16.vlgmr.msra.gmra.mxu2 %v203_v49 }
 0x1b3   :  { %v281_v51 = vpop.f32.mrf.mxu2 }
 0x1b4   :  { %v282_v52 = vadd.f32 %v387_v50, %v281_v51 }
 0x1b6   :  { %287 = vst.msk [vmem:[%s562_s7] sm:$0xff] %vm286_vm1, %v282_v52 }
 0x1bb   :  { %v283_v53 = vpop.f32.mrf.mxu2 }
 0x1bc   :  { %v284_v54 = vadd.f32 %v387_v50, %v283_v53 }
 0x1be   :  { %288 = vst.msk [vmem:[%s562_s7 + $0x8] sm:$0xff] %vm286_vm1, %v284_v54 }
 0x1bf   :  { %293 = vsyncpa [#allocation3], 1 }
 0x1c0   :  { %294 = vsyncpa [#allocation5], 1 }

</bundles_post_ra>
